<compile_context>
chip_gen: v6e
topology: v6e:2x2x1
jax: 0.10.0
libtpu: 0.0.40
codegen_flags: <defaults>
</compile_context>

<pallas_src>
import functools

import jax
import jax.numpy as jnp
from jax import lax
from jax.experimental import pallas as pl
from jax.experimental.pallas import tpu as pltpu


def _sigmoid(z):
    return 1.0 / (1.0 + jnp.exp(-z))


def _scca_kernel(x_ref, convw_ref, w1_ref, w2_ref, dist_ref, out_ref, att_ref,
                 *, patches, blend):
    # x_ref    : (TB, C*P*P) VMEM   batch block of x, spatial flattened into lanes
    # convw_ref: (18,)       SMEM   Conv2d(1,2,3,3) weights flattened [in_c, kh, kw]
    # w1_ref   : (P*P, H)    VMEM   fc[0].weight^T  (resident)
    # w2_ref   : (1, H)      VMEM   fc[2].weight    (resident)
    # dist_ref : (1, P*P)    VMEM   batch-invariant distance-from-center map (resident)
    # out_ref  : (TB, C*P*P)        attention_map * x
    # att_ref  : (TB, P*P)          attention_map
    P = patches
    PP = P * P
    TB = x_ref.shape[0]
    C = x_ref.shape[1] // PP

    def chan(c):
        # static, 128-aligned lane slice of the current block (zero-cost view + load)
        return x_ref[:, c * PP:(c + 1) * PP].astype(jnp.float32)

    # ---- channel mean / max pooling (torch dim=1) -> two (TB, PP) maps ----
    x0 = chan(0)
    avg = x0
    mx = x0
    for c in range(1, C):
        xc = chan(c)
        avg = avg + xc
        mx = jnp.maximum(mx, xc)
    avg = avg * (1.0 / C)
    pooled = (avg, mx)

    # ---- Conv2d(2 -> 1, k=3, padding=1, bias=False) on the flattened maps ----
    # Tap (di,dj): lane roll by -(di*P+dj) plus an edge mask that recreates the conv's
    # zero padding (and kills roll wrap-around).  Rolls go to the otherwise idle XLU slot.
    lane = lax.broadcasted_iota(jnp.int32, (TB, PP), 1)
    colv = lane % P
    m_up = lane >= P              # row i-1 exists
    m_down = lane < PP - P        # row i+1 exists
    m_left = colv >= 1            # col j-1 exists
    m_right = colv < P - 1        # col j+1 exists

    acc = jnp.zeros((TB, PP), jnp.float32)
    for kh in range(3):
        for kw in range(3):
            di, dj = kh - 1, kw - 1
            off = di * P + dj
            mask = None
            if di == -1:
                mask = m_up
            elif di == 1:
                mask = m_down
            if dj == -1:
                mask = m_left if mask is None else jnp.logical_and(mask, m_left)
            elif dj == 1:
                mask = m_right if mask is None else jnp.logical_and(mask, m_right)
            for c in range(2):
                w = convw_ref[c * 9 + kh * 3 + kw]          # f32 scalar from SMEM
                if off == 0:
                    src = pooled[c]
                else:
                    src = pltpu.roll(pooled[c], shift=(-off) % PP, axis=1)
                if mask is not None:
                    src = jnp.where(mask, src, 0.0)
                acc = acc + w * src
    fm = _sigmoid(acc)                                      # feature_map, (TB, PP)

    # ---- para_b = feature_map.view(b,-1)[:, P*P//2]  (flat index -> valid for any P) ----
    para_b = fm[:, PP // 2:PP // 2 + 1]                     # (TB, 1)

    # ---- para_k = -Softplus(fc2(ReLU(fc1(fm))));  fc1 = one f32 MXU matmul ----
    h1 = jnp.dot(fm, w1_ref[...], preferred_element_type=jnp.float32)    # (TB, H)
    h1 = jnp.maximum(h1, 0.0)
    k_lin = jnp.sum(h1 * w2_ref[...], axis=1, keepdims=True)             # (TB, 1)
    # Stable softplus; log(1+exp(-|x|)) == log1p(exp(-|x|)) to f32 accuracy on this range
    # (and matches torch's threshold=20 linearization).
    softplus = jnp.maximum(k_lin, 0.0) + jnp.log(1.0 + jnp.exp(-jnp.abs(k_lin)))
    para_k = -softplus                                      # (TB, 1)
    # TODO(synk): the PyTorch forward print()s para_k each call; debug side effect omitted.

    # ---- blended attention map (dist map precomputed in the wrapper, resident VMEM) ----
    att_sig = _sigmoid(dist_ref[...] * para_k + para_b)     # (TB, PP)
    cut_map = 1.0 - jnp.abs(fm - para_b)                    # (TB, PP)
    att = blend * att_sig + (1.0 - blend) * cut_map         # (TB, PP)

    # ---- outputs: lane-dense, 128-aligned static slices -> unmasked full-width stores ----
    for c in range(C):
        out_ref[:, c * PP:(c + 1) * PP] = (att * chan(c)).astype(out_ref.dtype)
    att_ref[...] = att.astype(att_ref.dtype)


def _round_up(a, m):
    return ((a + m - 1) // m) * m


def space_center_concentrate_attention(x, conv_w, fc1_w, fc2_w, *, weight=0.5,
                                        block_batch=128):
    """x: (B, C, P, P). conv_w: (1,2,3,3). fc1_w: (P*P//2, P*P). fc2_w: (1, P*P//2)."""
    B, C, P, P2 = x.shape
    assert P == P2, "spatial dims must be patches x patches"
    PP = P * P
    H = PP // 2
    assert conv_w.shape == (1, 2, 3, 3)
    assert fc1_w.shape == (H, PP) and fc2_w.shape == (1, H)

    # Batch tile: TB rows per grid step (multiple of 8 for sublane alignment); pad B up.
    TB = min(_round_up(block_batch, 8), _round_up(B, 8))
    Bp = _round_up(B, TB)

    # Row-major reshape (free); no spatial padding of x -> x is read from HBM exactly once.
    x_flat = x.reshape(B, C * PP)
    if Bp != B:
        x_flat = jnp.pad(x_flat, ((0, Bp - B), (0, 0)))

    convw_flat = conv_w.reshape(18).astype(jnp.float32)
    w1 = jnp.transpose(fc1_w, (1, 0)).astype(jnp.float32)      # (PP, H) so h1 = fm @ w1
    w2 = fc2_w.astype(jnp.float32)                              # (1, H)

    # Batch-invariant distance map == the module's self.mask (half-pixel centre offset).
    r = jnp.arange(P, dtype=jnp.float32) + (0.5 - P / 2.0)
    dist = jnp.sqrt(r[:, None] ** 2 + r[None, :] ** 2).reshape(1, PP)

    kernel = functools.partial(_scca_kernel, patches=P, blend=float(weight))

    out_flat, att_flat = pl.pallas_call(
        kernel,
        out_shape=(
            jax.ShapeDtypeStruct((Bp, C * PP), x.dtype),
            jax.ShapeDtypeStruct((Bp, PP), x.dtype),
        ),
        grid_spec=pltpu.PrefetchScalarGridSpec(
            num_scalar_prefetch=0,
            grid=(Bp // TB,),
            in_specs=[
                pl.BlockSpec((TB, C * PP), lambda b: (b, 0)),            # x batch block
                pl.BlockSpec(memory_space=pltpu.MemorySpace.SMEM),       # conv taps (18,)
                pl.BlockSpec((PP, H), lambda b: (0, 0)),                 # fc1 (resident)
                pl.BlockSpec((1, H), lambda b: (0, 0)),                  # fc2 (resident)
                pl.BlockSpec((1, PP), lambda b: (0, 0)),                 # dist (resident)
            ],
            out_specs=[
                pl.BlockSpec((TB, C * PP), lambda b: (b, 0)),
                pl.BlockSpec((TB, PP), lambda b: (b, 0)),
            ],
        ),
        compiler_params=pltpu.CompilerParams(
            dimension_semantics=("parallel",)),
    )(x_flat, convw_flat, w1, w2, dist)

    out = out_flat[:B].reshape(B, C, P, P)
    att = att_flat[:B].reshape(B, 1, P, P)
    return out, att


def _reference(x, conv_w, fc1_w, fc2_w, weight=0.5):
    B, C, P, _ = x.shape
    avg = jnp.mean(x, axis=1, keepdims=True)
    mx = jnp.max(x, axis=1, keepdims=True)
    feat = jnp.concatenate([avg, mx], axis=1)                        # (B, 2, P, P)
    featp = jnp.pad(feat, ((0, 0), (0, 0), (1, 1), (1, 1)))
    conv = jnp.zeros((B, P, P), jnp.float32)
    for c in range(2):
        for ki in range(3):
            for kj in range(3):
                conv = conv + conv_w[0, c, ki, kj] * featp[:, c, ki:ki + P, kj:kj + P]
    fm = _sigmoid(conv)                                              # (B, P, P)
    fm_flat = fm.reshape(B, P * P)
    para_b = fm_flat[:, (P * P) // 2]                                # (B,)
    h1 = jnp.sum(fm_flat[:, None, :] * fc1_w[None, :, :], axis=-1)   # (B, H) exact f32
    h1 = jnp.maximum(h1, 0.0)
    k_lin = jnp.sum(h1 * fc2_w, axis=-1)                             # (B,)
    sp = jnp.maximum(k_lin, 0.0) + jnp.log(1.0 + jnp.exp(-jnp.abs(k_lin)))
    para_k = -sp                                                     # (B,)
    r = jnp.arange(P, dtype=jnp.float32)[:, None] + (0.5 - P / 2.0)
    c2 = jnp.arange(P, dtype=jnp.float32)[None, :] + (0.5 - P / 2.0)
    dist = jnp.sqrt(r * r + c2 * c2)                                 # (P, P)
    att_sig = _sigmoid(dist[None] * para_k[:, None, None] + para_b[:, None, None])
    cut = 1.0 - jnp.abs(fm - para_b[:, None, None])
    att = weight * att_sig + (1.0 - weight) * cut                    # (B, P, P)
    att4 = att[:, None]                                              # (B, 1, P, P)
    return att4 * x, att4


if __name__ == "__main__":
    B, C, P = 2, 4, 16            # batch, channels, patches  ->  x: (2, 4, 16, 16)
    H = (P * P) // 2

    key = jax.random.PRNGKey(0)
    kx, k1, k2, k3 = jax.random.split(key, 4)

    x = jax.random.normal(kx, (B, C, P, P), dtype=jnp.float32)

    lim_c = 1.0 / (2 * 3 * 3) ** 0.5
    lim_1 = 1.0 / (P * P) ** 0.5
    lim_2 = 1.0 / H ** 0.5
    conv_w = jax.random.uniform(k1, (1, 2, 3, 3), minval=-lim_c, maxval=lim_c, dtype=jnp.float32)
    fc1_w = jax.random.uniform(k2, (H, P * P), minval=-lim_1, maxval=lim_1, dtype=jnp.float32)
    fc2_w = jax.random.uniform(k3, (1, H), minval=-lim_2, maxval=lim_2, dtype=jnp.float32)

    out, att = space_center_concentrate_attention(x, conv_w, fc1_w, fc2_w, weight=0.5)
    out = jax.block_until_ready(out)
    att = jax.block_until_ready(att)

    ref_out, ref_att = _reference(x, conv_w, fc1_w, fc2_w, weight=0.5)

    assert out.shape == (B, C, P, P) and att.shape == (B, 1, P, P)
    # tolerance allows for MXU f32 accumulation-order differences vs. the pure-VPU reference
    assert jnp.allclose(att, ref_att, atol=5e-4, rtol=5e-4), "attention map mismatch vs reference"
    assert jnp.allclose(out, ref_out, atol=5e-4, rtol=5e-4), "output mismatch vs reference"

    print("KERNEL_OK")
</pallas_src>

<mosaic_0001>
module attributes {stable_mosaic.version = 11 : i64} {
  func.func @_scca_kernel(%arg0: i32, %arg1: memref<8x1024xf32, #tpu.memory_space<vmem>>, %arg2: memref<18xf32, #tpu.memory_space<smem>>, %arg3: memref<256x128xf32, #tpu.memory_space<vmem>>, %arg4: memref<1x128xf32, #tpu.memory_space<vmem>>, %arg5: memref<1x256xf32, #tpu.memory_space<vmem>>, %arg6: memref<8x1024xf32, #tpu.memory_space<vmem>>, %arg7: memref<8x256xf32, #tpu.memory_space<vmem>>) attributes {dimension_semantics = [#tpu.dimension_semantics<parallel>], iteration_bounds = array<i64: 1>, scalar_prefetch = 0 : i64, scratch_operands = 0 : i64, tpu.core_type = #tpu.core_type<tc>, window_params = [{transform_indices = @transform_0, window_bounds = array<i64: 8, 1024>}, {transform_indices = @transform_1, window_bounds = array<i64: 18>}, {pipeline_mode = #tpu.pipeline_mode<synchronous>, transform_indices = @transform_2, window_bounds = array<i64: 256, 128>}, {pipeline_mode = #tpu.pipeline_mode<synchronous>, transform_indices = @transform_3, window_bounds = array<i64: 1, 128>}, {pipeline_mode = #tpu.pipeline_mode<synchronous>, transform_indices = @transform_4, window_bounds = array<i64: 1, 256>}, {transform_indices = @transform_5, window_bounds = array<i64: 8, 1024>}, {transform_indices = @transform_6, window_bounds = array<i64: 8, 256>}]} {
    %c0 = arith.constant 0 : index
    %c0_0 = arith.constant 0 : index
    %0 = vector.load %arg1[%c0, %c0_0] : memref<8x1024xf32, #tpu.memory_space<vmem>>, vector<8x256xf32>
    %c0_1 = arith.constant 0 : index
    %c256 = arith.constant 256 : index
    %1 = vector.load %arg1[%c0_1, %c256] : memref<8x1024xf32, #tpu.memory_space<vmem>>, vector<8x256xf32>
    %2 = arith.addf %0, %1 : vector<8x256xf32>
    %3 = arith.maximumf %0, %1 : vector<8x256xf32>
    %c0_2 = arith.constant 0 : index
    %c512 = arith.constant 512 : index
    %4 = vector.load %arg1[%c0_2, %c512] : memref<8x1024xf32, #tpu.memory_space<vmem>>, vector<8x256xf32>
    %5 = arith.addf %2, %4 : vector<8x256xf32>
    %6 = arith.maximumf %3, %4 : vector<8x256xf32>
    %c0_3 = arith.constant 0 : index
    %c768 = arith.constant 768 : index
    %7 = vector.load %arg1[%c0_3, %c768] : memref<8x1024xf32, #tpu.memory_space<vmem>>, vector<8x256xf32>
    %8 = arith.addf %5, %7 : vector<8x256xf32>
    %9 = arith.maximumf %6, %7 : vector<8x256xf32>
    %cst = arith.constant 2.500000e-01 : f32
    %10 = vector.broadcast %cst : f32 to vector<8x256xf32>
    %11 = arith.mulf %8, %10 : vector<8x256xf32>
    %12 = tpu.iota {dimensions = array<i32: 1>} : vector<8x256xi32>
    %c16_i32 = arith.constant 16 : i32
    %c0_i32 = arith.constant 0 : i32
    %13 = arith.cmpi eq, %c16_i32, %c0_i32 : i32
    %c1_i32 = arith.constant 1 : i32
    %14 = arith.select %13, %c1_i32, %c16_i32 : i32
    %15 = vector.broadcast %14 : i32 to vector<8x256xi32>
    %16 = arith.remsi %12, %15 : vector<8x256xi32>
    %c0_i32_4 = arith.constant 0 : i32
    %17 = vector.broadcast %c0_i32_4 : i32 to vector<8x256xi32>
    %18 = arith.cmpi ne, %16, %17 : vector<8x256xi32>
    %c0_i32_5 = arith.constant 0 : i32
    %19 = vector.broadcast %c0_i32_5 : i32 to vector<8x256xi32>
    %20 = arith.cmpi slt, %16, %19 : vector<8x256xi32>
    %c0_i32_6 = arith.constant 0 : i32
    %21 = arith.cmpi slt, %14, %c0_i32_6 : i32
    %22 = vector.broadcast %21 : i1 to vector<8x256xi1>
    %23 = vector.broadcast %22 : vector<8x256xi1> to vector<8x256xi1>
    %24 = arith.xori %20, %23 : vector<8x256xi1>
    %25 = arith.andi %24, %18 : vector<8x256xi1>
    %26 = vector.broadcast %14 : i32 to vector<8x256xi32>
    %27 = arith.addi %16, %26 : vector<8x256xi32>
    %28 = arith.select %25, %27, %16 : vector<8x256xi1>, vector<8x256xi32>
    %c16_i32_7 = arith.constant 16 : i32
    %29 = vector.broadcast %c16_i32_7 : i32 to vector<8x256xi32>
    %30 = arith.cmpi sge, %12, %29 : vector<8x256xi32>
    %c240_i32 = arith.constant 240 : i32
    %31 = vector.broadcast %c240_i32 : i32 to vector<8x256xi32>
    %32 = arith.cmpi slt, %12, %31 : vector<8x256xi32>
    %c1_i32_8 = arith.constant 1 : i32
    %33 = vector.broadcast %c1_i32_8 : i32 to vector<8x256xi32>
    %34 = arith.cmpi sge, %28, %33 : vector<8x256xi32>
    %c15_i32 = arith.constant 15 : i32
    %35 = vector.broadcast %c15_i32 : i32 to vector<8x256xi32>
    %36 = arith.cmpi slt, %28, %35 : vector<8x256xi32>
    %cst_9 = arith.constant 0.000000e+00 : f32
    %37 = vector.broadcast %cst_9 : f32 to vector<8x256xf32>
    %38 = arith.andi %30, %34 : vector<8x256xi1>
    %c0_10 = arith.constant 0 : index
    %39 = memref.load %arg2[%c0_10] : memref<18xf32, #tpu.memory_space<smem>>
    %c17_i32 = arith.constant 17 : i32
    %40 = tpu.dynamic_rotate %11 by %c17_i32 dim 1 : vector<8x256xf32>, i32 -> vector<8x256xf32>
    %cst_11 = arith.constant 0.000000e+00 : f32
    %41 = vector.broadcast %cst_11 : f32 to vector<8x256xf32>
    %42 = arith.select %38, %40, %41 : vector<8x256xi1>, vector<8x256xf32>
    %43 = vector.broadcast %39 : f32 to vector<8x256xf32>
    %44 = arith.mulf %43, %42 : vector<8x256xf32>
    %45 = arith.addf %37, %44 : vector<8x256xf32>
    %c9 = arith.constant 9 : index
    %46 = memref.load %arg2[%c9] : memref<18xf32, #tpu.memory_space<smem>>
    %c17_i32_12 = arith.constant 17 : i32
    %47 = tpu.dynamic_rotate %9 by %c17_i32_12 dim 1 : vector<8x256xf32>, i32 -> vector<8x256xf32>
    %cst_13 = arith.constant 0.000000e+00 : f32
    %48 = vector.broadcast %cst_13 : f32 to vector<8x256xf32>
    %49 = arith.select %38, %47, %48 : vector<8x256xi1>, vector<8x256xf32>
    %50 = vector.broadcast %46 : f32 to vector<8x256xf32>
    %51 = arith.mulf %50, %49 : vector<8x256xf32>
    %52 = arith.addf %45, %51 : vector<8x256xf32>
    %c1 = arith.constant 1 : index
    %53 = memref.load %arg2[%c1] : memref<18xf32, #tpu.memory_space<smem>>
    %c16_i32_14 = arith.constant 16 : i32
    %54 = tpu.dynamic_rotate %11 by %c16_i32_14 dim 1 : vector<8x256xf32>, i32 -> vector<8x256xf32>
    %cst_15 = arith.constant 0.000000e+00 : f32
    %55 = vector.broadcast %cst_15 : f32 to vector<8x256xf32>
    %56 = arith.select %30, %54, %55 : vector<8x256xi1>, vector<8x256xf32>
    %57 = vector.broadcast %53 : f32 to vector<8x256xf32>
    %58 = arith.mulf %57, %56 : vector<8x256xf32>
    %59 = arith.addf %52, %58 : vector<8x256xf32>
    %c10 = arith.constant 10 : index
    %60 = memref.load %arg2[%c10] : memref<18xf32, #tpu.memory_space<smem>>
    %c16_i32_16 = arith.constant 16 : i32
    %61 = tpu.dynamic_rotate %9 by %c16_i32_16 dim 1 : vector<8x256xf32>, i32 -> vector<8x256xf32>
    %cst_17 = arith.constant 0.000000e+00 : f32
    %62 = vector.broadcast %cst_17 : f32 to vector<8x256xf32>
    %63 = arith.select %30, %61, %62 : vector<8x256xi1>, vector<8x256xf32>
    %64 = vector.broadcast %60 : f32 to vector<8x256xf32>
    %65 = arith.mulf %64, %63 : vector<8x256xf32>
    %66 = arith.addf %59, %65 : vector<8x256xf32>
    %67 = arith.andi %30, %36 : vector<8x256xi1>
    %c2 = arith.constant 2 : index
    %68 = memref.load %arg2[%c2] : memref<18xf32, #tpu.memory_space<smem>>
    %c15_i32_18 = arith.constant 15 : i32
    %69 = tpu.dynamic_rotate %11 by %c15_i32_18 dim 1 : vector<8x256xf32>, i32 -> vector<8x256xf32>
    %cst_19 = arith.constant 0.000000e+00 : f32
    %70 = vector.broadcast %cst_19 : f32 to vector<8x256xf32>
    %71 = arith.select %67, %69, %70 : vector<8x256xi1>, vector<8x256xf32>
    %72 = vector.broadcast %68 : f32 to vector<8x256xf32>
    %73 = arith.mulf %72, %71 : vector<8x256xf32>
    %74 = arith.addf %66, %73 : vector<8x256xf32>
    %c11 = arith.constant 11 : index
    %75 = memref.load %arg2[%c11] : memref<18xf32, #tpu.memory_space<smem>>
    %c15_i32_20 = arith.constant 15 : i32
    %76 = tpu.dynamic_rotate %9 by %c15_i32_20 dim 1 : vector<8x256xf32>, i32 -> vector<8x256xf32>
    %cst_21 = arith.constant 0.000000e+00 : f32
    %77 = vector.broadcast %cst_21 : f32 to vector<8x256xf32>
    %78 = arith.select %67, %76, %77 : vector<8x256xi1>, vector<8x256xf32>
    %79 = vector.broadcast %75 : f32 to vector<8x256xf32>
    %80 = arith.mulf %79, %78 : vector<8x256xf32>
    %81 = arith.addf %74, %80 : vector<8x256xf32>
    %c3 = arith.constant 3 : index
    %82 = memref.load %arg2[%c3] : memref<18xf32, #tpu.memory_space<smem>>
    %c1_i32_22 = arith.constant 1 : i32
    %83 = tpu.dynamic_rotate %11 by %c1_i32_22 dim 1 : vector<8x256xf32>, i32 -> vector<8x256xf32>
    %cst_23 = arith.constant 0.000000e+00 : f32
    %84 = vector.broadcast %cst_23 : f32 to vector<8x256xf32>
    %85 = arith.select %34, %83, %84 : vector<8x256xi1>, vector<8x256xf32>
    %86 = vector.broadcast %82 : f32 to vector<8x256xf32>
    %87 = arith.mulf %86, %85 : vector<8x256xf32>
    %88 = arith.addf %81, %87 : vector<8x256xf32>
    %c12 = arith.constant 12 : index
    %89 = memref.load %arg2[%c12] : memref<18xf32, #tpu.memory_space<smem>>
    %c1_i32_24 = arith.constant 1 : i32
    %90 = tpu.dynamic_rotate %9 by %c1_i32_24 dim 1 : vector<8x256xf32>, i32 -> vector<8x256xf32>
    %cst_25 = arith.constant 0.000000e+00 : f32
    %91 = vector.broadcast %cst_25 : f32 to vector<8x256xf32>
    %92 = arith.select %34, %90, %91 : vector<8x256xi1>, vector<8x256xf32>
    %93 = vector.broadcast %89 : f32 to vector<8x256xf32>
    %94 = arith.mulf %93, %92 : vector<8x256xf32>
    %95 = arith.addf %88, %94 : vector<8x256xf32>
    %c4 = arith.constant 4 : index
    %96 = memref.load %arg2[%c4] : memref<18xf32, #tpu.memory_space<smem>>
    %97 = vector.broadcast %96 : f32 to vector<8x256xf32>
    %98 = arith.mulf %97, %11 : vector<8x256xf32>
    %99 = arith.addf %95, %98 : vector<8x256xf32>
    %c13 = arith.constant 13 : index
    %100 = memref.load %arg2[%c13] : memref<18xf32, #tpu.memory_space<smem>>
    %101 = vector.broadcast %100 : f32 to vector<8x256xf32>
    %102 = arith.mulf %101, %9 : vector<8x256xf32>
    %103 = arith.addf %99, %102 : vector<8x256xf32>
    %c5 = arith.constant 5 : index
    %104 = memref.load %arg2[%c5] : memref<18xf32, #tpu.memory_space<smem>>
    %c255_i32 = arith.constant 255 : i32
    %105 = tpu.dynamic_rotate %11 by %c255_i32 dim 1 : vector<8x256xf32>, i32 -> vector<8x256xf32>
    %cst_26 = arith.constant 0.000000e+00 : f32
    %106 = vector.broadcast %cst_26 : f32 to vector<8x256xf32>
    %107 = arith.select %36, %105, %106 : vector<8x256xi1>, vector<8x256xf32>
    %108 = vector.broadcast %104 : f32 to vector<8x256xf32>
    %109 = arith.mulf %108, %107 : vector<8x256xf32>
    %110 = arith.addf %103, %109 : vector<8x256xf32>
    %c14 = arith.constant 14 : index
    %111 = memref.load %arg2[%c14] : memref<18xf32, #tpu.memory_space<smem>>
    %c255_i32_27 = arith.constant 255 : i32
    %112 = tpu.dynamic_rotate %9 by %c255_i32_27 dim 1 : vector<8x256xf32>, i32 -> vector<8x256xf32>
    %cst_28 = arith.constant 0.000000e+00 : f32
    %113 = vector.broadcast %cst_28 : f32 to vector<8x256xf32>
    %114 = arith.select %36, %112, %113 : vector<8x256xi1>, vector<8x256xf32>
    %115 = vector.broadcast %111 : f32 to vector<8x256xf32>
    %116 = arith.mulf %115, %114 : vector<8x256xf32>
    %117 = arith.addf %110, %116 : vector<8x256xf32>
    %118 = arith.andi %32, %34 : vector<8x256xi1>
    %c6 = arith.constant 6 : index
    %119 = memref.load %arg2[%c6] : memref<18xf32, #tpu.memory_space<smem>>
    %c241_i32 = arith.constant 241 : i32
    %120 = tpu.dynamic_rotate %11 by %c241_i32 dim 1 : vector<8x256xf32>, i32 -> vector<8x256xf32>
    %cst_29 = arith.constant 0.000000e+00 : f32
    %121 = vector.broadcast %cst_29 : f32 to vector<8x256xf32>
    %122 = arith.select %118, %120, %121 : vector<8x256xi1>, vector<8x256xf32>
    %123 = vector.broadcast %119 : f32 to vector<8x256xf32>
    %124 = arith.mulf %123, %122 : vector<8x256xf32>
    %125 = arith.addf %117, %124 : vector<8x256xf32>
    %c15 = arith.constant 15 : index
    %126 = memref.load %arg2[%c15] : memref<18xf32, #tpu.memory_space<smem>>
    %c241_i32_30 = arith.constant 241 : i32
    %127 = tpu.dynamic_rotate %9 by %c241_i32_30 dim 1 : vector<8x256xf32>, i32 -> vector<8x256xf32>
    %cst_31 = arith.constant 0.000000e+00 : f32
    %128 = vector.broadcast %cst_31 : f32 to vector<8x256xf32>
    %129 = arith.select %118, %127, %128 : vector<8x256xi1>, vector<8x256xf32>
    %130 = vector.broadcast %126 : f32 to vector<8x256xf32>
    %131 = arith.mulf %130, %129 : vector<8x256xf32>
    %132 = arith.addf %125, %131 : vector<8x256xf32>
    %c7 = arith.constant 7 : index
    %133 = memref.load %arg2[%c7] : memref<18xf32, #tpu.memory_space<smem>>
    %c240_i32_32 = arith.constant 240 : i32
    %134 = tpu.dynamic_rotate %11 by %c240_i32_32 dim 1 : vector<8x256xf32>, i32 -> vector<8x256xf32>
    %cst_33 = arith.constant 0.000000e+00 : f32
    %135 = vector.broadcast %cst_33 : f32 to vector<8x256xf32>
    %136 = arith.select %32, %134, %135 : vector<8x256xi1>, vector<8x256xf32>
    %137 = vector.broadcast %133 : f32 to vector<8x256xf32>
    %138 = arith.mulf %137, %136 : vector<8x256xf32>
    %139 = arith.addf %132, %138 : vector<8x256xf32>
    %c16 = arith.constant 16 : index
    %140 = memref.load %arg2[%c16] : memref<18xf32, #tpu.memory_space<smem>>
    %c240_i32_34 = arith.constant 240 : i32
    %141 = tpu.dynamic_rotate %9 by %c240_i32_34 dim 1 : vector<8x256xf32>, i32 -> vector<8x256xf32>
    %cst_35 = arith.constant 0.000000e+00 : f32
    %142 = vector.broadcast %cst_35 : f32 to vector<8x256xf32>
    %143 = arith.select %32, %141, %142 : vector<8x256xi1>, vector<8x256xf32>
    %144 = vector.broadcast %140 : f32 to vector<8x256xf32>
    %145 = arith.mulf %144, %143 : vector<8x256xf32>
    %146 = arith.addf %139, %145 : vector<8x256xf32>
    %147 = arith.andi %32, %36 : vector<8x256xi1>
    %c8 = arith.constant 8 : index
    %148 = memref.load %arg2[%c8] : memref<18xf32, #tpu.memory_space<smem>>
    %c239_i32 = arith.constant 239 : i32
    %149 = tpu.dynamic_rotate %11 by %c239_i32 dim 1 : vector<8x256xf32>, i32 -> vector<8x256xf32>
    %cst_36 = arith.constant 0.000000e+00 : f32
    %150 = vector.broadcast %cst_36 : f32 to vector<8x256xf32>
    %151 = arith.select %147, %149, %150 : vector<8x256xi1>, vector<8x256xf32>
    %152 = vector.broadcast %148 : f32 to vector<8x256xf32>
    %153 = arith.mulf %152, %151 : vector<8x256xf32>
    %154 = arith.addf %146, %153 : vector<8x256xf32>
    %c17 = arith.constant 17 : index
    %155 = memref.load %arg2[%c17] : memref<18xf32, #tpu.memory_space<smem>>
    %c239_i32_37 = arith.constant 239 : i32
    %156 = tpu.dynamic_rotate %9 by %c239_i32_37 dim 1 : vector<8x256xf32>, i32 -> vector<8x256xf32>
    %cst_38 = arith.constant 0.000000e+00 : f32
    %157 = vector.broadcast %cst_38 : f32 to vector<8x256xf32>
    %158 = arith.select %147, %156, %157 : vector<8x256xi1>, vector<8x256xf32>
    %159 = vector.broadcast %155 : f32 to vector<8x256xf32>
    %160 = arith.mulf %159, %158 : vector<8x256xf32>
    %161 = arith.addf %154, %160 : vector<8x256xf32>
    %cst_39 = arith.constant 0.000000e+00 : f32
    %162 = vector.broadcast %cst_39 : f32 to vector<8x256xf32>
    %163 = arith.subf %162, %161 : vector<8x256xf32>
    %164 = math.exp %163 : vector<8x256xf32>
    %cst_40 = arith.constant 1.000000e+00 : f32
    %165 = vector.broadcast %cst_40 : f32 to vector<8x256xf32>
    %166 = arith.addf %165, %164 : vector<8x256xf32>
    %cst_41 = arith.constant 1.000000e+00 : f32
    %167 = vector.broadcast %cst_41 : f32 to vector<8x256xf32>
    %168 = arith.divf %167, %166 : vector<8x256xf32>
    %169 = vector.extract_strided_slice %168 {offsets = [0, 128], sizes = [8, 1], strides = [1, 1]} : vector<8x256xf32> to vector<8x1xf32>
    %c0_42 = arith.constant 0 : index
    %c0_43 = arith.constant 0 : index
    %170 = vector.load %arg3[%c0_42, %c0_43] : memref<256x128xf32, #tpu.memory_space<vmem>>, vector<256x128xf32>
    %cst_44 = arith.constant dense<0.000000e+00> : vector<8x128xf32>
    %171 = tpu.matmul %168, %170, %cst_44 {dimension_numbers = #tpu.dot_dimension_numbers<[1], [0], [0], [1], [0, 0, 1, 1], [], []>} : vector<8x256xf32>, vector<256x128xf32>, vector<8x128xf32> -> vector<8x128xf32>
    %cst_45 = arith.constant 0.000000e+00 : f32
    %172 = vector.broadcast %cst_45 : f32 to vector<8x128xf32>
    %173 = arith.maximumf %171, %172 : vector<8x128xf32>
    %c0_46 = arith.constant 0 : index
    %c0_47 = arith.constant 0 : index
    %174 = vector.load %arg4[%c0_46, %c0_47] : memref<1x128xf32, #tpu.memory_space<vmem>>, vector<1x128xf32>
    %175 = vector.broadcast %174 : vector<1x128xf32> to vector<8x128xf32>
    %176 = arith.mulf %173, %175 : vector<8x128xf32>
    %cst_48 = arith.constant dense<0.000000e+00> : vector<8xf32>
    %177 = vector.multi_reduction <add>, %176, %cst_48 [1] : vector<8x128xf32> to vector<8xf32>
    %178 = vector.shape_cast %177 : vector<8xf32> to vector<8x1xf32>
    %cst_49 = arith.constant 0.000000e+00 : f32
    %179 = vector.broadcast %cst_49 : f32 to vector<8x1xf32>
    %180 = arith.maximumf %178, %179 : vector<8x1xf32>
    %181 = math.absf %178 : vector<8x1xf32>
    %cst_50 = arith.constant 0.000000e+00 : f32
    %182 = vector.broadcast %cst_50 : f32 to vector<8x1xf32>
    %183 = arith.subf %182, %181 : vector<8x1xf32>
    %184 = math.exp %183 : vector<8x1xf32>
    %cst_51 = arith.constant 1.000000e+00 : f32
    %185 = vector.broadcast %cst_51 : f32 to vector<8x1xf32>
    %186 = arith.addf %185, %184 : vector<8x1xf32>
    %187 = math.log %186 : vector<8x1xf32>
    %188 = arith.addf %180, %187 : vector<8x1xf32>
    %cst_52 = arith.constant 0.000000e+00 : f32
    %189 = vector.broadcast %cst_52 : f32 to vector<8x1xf32>
    %190 = arith.subf %189, %188 : vector<8x1xf32>
    %c0_53 = arith.constant 0 : index
    %c0_54 = arith.constant 0 : index
    %191 = vector.load %arg5[%c0_53, %c0_54] : memref<1x256xf32, #tpu.memory_space<vmem>>, vector<1x256xf32>
    %192 = vector.broadcast %191 : vector<1x256xf32> to vector<8x256xf32>
    %193 = vector.broadcast %190 : vector<8x1xf32> to vector<8x256xf32>
    %194 = arith.mulf %192, %193 : vector<8x256xf32>
    %195 = vector.broadcast %169 : vector<8x1xf32> to vector<8x256xf32>
    %196 = arith.addf %194, %195 : vector<8x256xf32>
    %cst_55 = arith.constant 0.000000e+00 : f32
    %197 = vector.broadcast %cst_55 : f32 to vector<8x256xf32>
    %198 = arith.subf %197, %196 : vector<8x256xf32>
    %199 = math.exp %198 : vector<8x256xf32>
    %cst_56 = arith.constant 1.000000e+00 : f32
    %200 = vector.broadcast %cst_56 : f32 to vector<8x256xf32>
    %201 = arith.addf %200, %199 : vector<8x256xf32>
    %cst_57 = arith.constant 1.000000e+00 : f32
    %202 = vector.broadcast %cst_57 : f32 to vector<8x256xf32>
    %203 = arith.divf %202, %201 : vector<8x256xf32>
    %204 = vector.broadcast %169 : vector<8x1xf32> to vector<8x256xf32>
    %205 = arith.subf %168, %204 : vector<8x256xf32>
    %206 = math.absf %205 : vector<8x256xf32>
    %cst_58 = arith.constant 1.000000e+00 : f32
    %207 = vector.broadcast %cst_58 : f32 to vector<8x256xf32>
    %208 = arith.subf %207, %206 : vector<8x256xf32>
    %cst_59 = arith.constant 5.000000e-01 : f32
    %209 = vector.broadcast %cst_59 : f32 to vector<8x256xf32>
    %210 = arith.mulf %209, %203 : vector<8x256xf32>
    %cst_60 = arith.constant 5.000000e-01 : f32
    %211 = vector.broadcast %cst_60 : f32 to vector<8x256xf32>
    %212 = arith.mulf %211, %208 : vector<8x256xf32>
    %213 = arith.addf %210, %212 : vector<8x256xf32>
    %c0_61 = arith.constant 0 : index
    %c0_62 = arith.constant 0 : index
    %214 = vector.load %arg1[%c0_61, %c0_62] : memref<8x1024xf32, #tpu.memory_space<vmem>>, vector<8x256xf32>
    %215 = arith.mulf %213, %214 : vector<8x256xf32>
    %c0_63 = arith.constant 0 : index
    %c0_64 = arith.constant 0 : index
    %216 = vector.load %arg6[%c0_63, %c0_64] : memref<8x1024xf32, #tpu.memory_space<vmem>>, vector<8x256xf32>
    tpu.vector_store %arg6[%c0_63, %c0_64], %215 {strides = array<i32>} : memref<8x1024xf32, #tpu.memory_space<vmem>>, vector<8x256xf32>,
    %c0_65 = arith.constant 0 : index
    %c256_66 = arith.constant 256 : index
    %217 = vector.load %arg1[%c0_65, %c256_66] : memref<8x1024xf32, #tpu.memory_space<vmem>>, vector<8x256xf32>
    %218 = arith.mulf %213, %217 : vector<8x256xf32>
    %c0_67 = arith.constant 0 : index
    %c256_68 = arith.constant 256 : index
    %219 = vector.load %arg6[%c0_67, %c256_68] : memref<8x1024xf32, #tpu.memory_space<vmem>>, vector<8x256xf32>
    tpu.vector_store %arg6[%c0_67, %c256_68], %218 {strides = array<i32>} : memref<8x1024xf32, #tpu.memory_space<vmem>>, vector<8x256xf32>,
    %c0_69 = arith.constant 0 : index
    %c512_70 = arith.constant 512 : index
    %220 = vector.load %arg1[%c0_69, %c512_70] : memref<8x1024xf32, #tpu.memory_space<vmem>>, vector<8x256xf32>
    %221 = arith.mulf %213, %220 : vector<8x256xf32>
    %c0_71 = arith.constant 0 : index
    %c512_72 = arith.constant 512 : index
    %222 = vector.load %arg6[%c0_71, %c512_72] : memref<8x1024xf32, #tpu.memory_space<vmem>>, vector<8x256xf32>
    tpu.vector_store %arg6[%c0_71, %c512_72], %221 {strides = array<i32>} : memref<8x1024xf32, #tpu.memory_space<vmem>>, vector<8x256xf32>,
    %c0_73 = arith.constant 0 : index
    %c768_74 = arith.constant 768 : index
    %223 = vector.load %arg1[%c0_73, %c768_74] : memref<8x1024xf32, #tpu.memory_space<vmem>>, vector<8x256xf32>
    %224 = arith.mulf %213, %223 : vector<8x256xf32>
    %c0_75 = arith.constant 0 : index
    %c768_76 = arith.constant 768 : index
    %225 = vector.load %arg6[%c0_75, %c768_76] : memref<8x1024xf32, #tpu.memory_space<vmem>>, vector<8x256xf32>
    tpu.vector_store %arg6[%c0_75, %c768_76], %224 {strides = array<i32>} : memref<8x1024xf32, #tpu.memory_space<vmem>>, vector<8x256xf32>,
    %c0_77 = arith.constant 0 : index
    %c0_78 = arith.constant 0 : index
    %226 = vector.load %arg7[%c0_77, %c0_78] : memref<8x256xf32, #tpu.memory_space<vmem>>, vector<8x256xf32>
    tpu.vector_store %arg7[%c0_77, %c0_78], %213 {strides = array<i32>} : memref<8x256xf32, #tpu.memory_space<vmem>>, vector<8x256xf32>,
    return
  }
  func.func @transform_0(%arg0: i32) -> (i32, i32) {
    %c0_i32 = arith.constant 0 : i32
    %c0_i32_0 = arith.constant 0 : i32
    return %arg0, %c0_i32 : i32, i32
  }
  func.func @transform_1(%arg0: i32) -> i32 {
    %c0_i32 = arith.constant 0 : i32
    %c0_i32_0 = arith.constant 0 : i32
    return %c0_i32 : i32
  }
  func.func @transform_2(%arg0: i32) -> (i32, i32) {
    %c0_i32 = arith.constant 0 : i32
    %c0_i32_0 = arith.constant 0 : i32
    %c0_i32_1 = arith.constant 0 : i32
    return %c0_i32, %c0_i32_0 : i32, i32
  }
  func.func @transform_3(%arg0: i32) -> (i32, i32) {
    %c0_i32 = arith.constant 0 : i32
    %c0_i32_0 = arith.constant 0 : i32
    %c0_i32_1 = arith.constant 0 : i32
    return %c0_i32, %c0_i32_0 : i32, i32
  }
  func.func @transform_4(%arg0: i32) -> (i32, i32) {
    %c0_i32 = arith.constant 0 : i32
    %c0_i32_0 = arith.constant 0 : i32
    %c0_i32_1 = arith.constant 0 : i32
    return %c0_i32, %c0_i32_0 : i32, i32
  }
  func.func @transform_5(%arg0: i32) -> (i32, i32) {
    %c0_i32 = arith.constant 0 : i32
    %c0_i32_0 = arith.constant 0 : i32
    return %arg0, %c0_i32 : i32, i32
  }
  func.func @transform_6(%arg0: i32) -> (i32, i32) {
    %c0_i32 = arith.constant 0 : i32
    %c0_i32_0 = arith.constant 0 : i32
    return %arg0, %c0_i32 : i32, i32
  }
}

</mosaic_0001>

<bundles_post_ra>
// kernel: tpu_custom_call.1
= control target key start
LH: loop header
LB: loop body
LE: loop exit
PB: predicated region body
PF: predicated region fallthrough
CT: control target
= control target key end

     0   :  { %12 = vsyncpa [#allocation3], 0  ;;  %s1189_s0 = inlined_call_operand.hbm [shape: f32[8,1024], index: 0, kind: input, shape index: {}]   ;;  %s1190_s1 = inlined_call_operand.vmem [shape: f32[18], index: 1, kind: input, shape index: {}]   ;;  %s1191_s2 = inlined_call_operand.hbm [shape: f32[256,128], index: 2, kind: input, shape index: {}]   ;;  %s1192_s3 = inlined_call_operand.vmem [shape: f32[1,128], index: 3, kind: input, shape index: {}]   ;;  %s1193_s4 = inlined_call_operand.vmem [shape: f32[1,256], index: 4, kind: input, shape index: {}]   ;;  %s1194_s5 = inlined_call_operand.hbm [shape: f32[8,1024], index: 5, kind: output, shape index: {0}]   ;;  %s1195_s6 = inlined_call_operand.hbm [shape: f32[8,256], index: 6, kind: output, shape index: {1}]  }
   0x1   :  { %13 = vsyncpa [#allocation5], 0 }
   0x2   :  { %14 = vsyncpa [#allocation8], 0 }
   0x3   :  { %15 = vsyncpa [#allocation4], 0 }
   0x4   :  { %16 = vsyncpa [#allocation11], 0  ;;  %s33_s23 = sshll.u32 %s1190_s1, 4  ;;  %s800_s24 = smov [#allocation2]   ;;  %s34_s23 = int_to_ptr.vmem [resolvable:$true] %s33_s23 }
   0x5   :  { %s23_s25 = sshll.u32 %s800_s24, 4  ;;  %s24_s25 = int_to_ptr.vmem [resolvable:$true] %s23_s25 }
   0x6   :  { %s706_s26 = scalar_lea.vmem %s24_s25, 1024  ;;  %p711_p1 = scmp.lt.s32.totalorder %s24_s25, %s24_s25 }
   0x7   :  { %p707_p0 = scmp.ne.s32.totalorder %s24_s25, %s706_s26  ;;  %p712_p2 = scmp.lt.s32.totalorder %s706_s26, %s706_s26 }
   0x9   :  { %p713_p3 = por %p712_p2, %p711_p1 }
   0xb   :  { %p714_p4 = pnand %p713_p3, %p707_p0 }
   0xd   :  { %717 = shalt.err (!%p714_p4)
}
   0xe   :  { %26 = dma.hbm_to_vmem [thread:$0]  %s1189_s0, 1024, %s24_s25, [#allocation3]  }
   0xf   :  { %s718_s29 = scalar_lea.vmem %s34_s23, 16  ;;  %p723_p6 = scmp.lt.s32.totalorder %s34_s23, %s34_s23 }
  0x10   :  { %p719_p5 = scmp.ne.s32.totalorder %s34_s23, %s718_s29  ;;  %p724_p7 = scmp.lt.s32.totalorder %s718_s29, %s718_s29 }
  0x12   :  { %p725_p8 = por %p724_p7, %p723_p6 }
  0x14   :  { %p726_p9 = pnand %p725_p8, %p719_p5 }
  0x16   :  { %729 = shalt.err (!%p726_p9)
}
  0x17   :  { %s801_s1 = smov [#allocation6]   ;;  %s802_s30 = smov [#allocation7]  }
  0x18   :  { %36 = dma.vmem_to_smem %s34_s23, 16, %s801_s1, [#allocation5]  }
  0x19   :  { %s42_s7 = sshll.u32 %s802_s30, 4  ;;  %s43_s7 = int_to_ptr.vmem [resolvable:$true] %s42_s7 }
  0x1a   :  { %s738_s8 = scalar_lea.vmem %s43_s7, 4096  ;;  %p743_p11 = scmp.lt.s32.totalorder %s43_s7, %s43_s7 }
  0x1b   :  { %p739_p10 = scmp.ne.s32.totalorder %s43_s7, %s738_s8  ;;  %p744_p12 = scmp.lt.s32.totalorder %s738_s8, %s738_s8 }
  0x1d   :  { %p745_p13 = por %p744_p12, %p743_p11 }
  0x1f   :  { %p746_p0 = pnand %p745_p13, %p739_p10 }
  0x21   :  { %749 = shalt.err (!%p746_p0)
}
  0x22   :  { %s803_s0 = smov 128   ;;  %s804_s9 = smov 8  }
  0x23   :  { %48 = dma.hbm_to_vmem [thread:$0]  %s1191_s2, 4096, %s43_s7, [#allocation8], %s803_s0, %s803_s0, %s804_s9  }
  0x24   :  { %790 = dma.done.wait [#allocation3], 1024  }
  0x25   :  { %791 = vsyncadd [#allocation3], 4294966272 }
  0x26   :  { %792 = dma.done.wait [#allocation5], 16  }
  0x27   :  { %793 = vsyncadd [#allocation5], 4294967280 }
  0x28   :  { %794 = dma.done.wait [#allocation8], 4096  }
  0x29   :  { %795 = vsyncadd [#allocation8], 4294963200 }
  0x2a   :  { %62 = sfence }
  0x2b   :  { %v860_v0 = vld [vmem:[#allocation2] sm:$0xff]  ;;  %v862_v1 = vld [vmem:[#allocation2 + $0x10] sm:$0xff]  ;;  %v870_v5 = vld [vmem:[#allocation2 + $0x8] sm:$0xff]  ;;  %s805_s2 = smov 17   ;;  %s806_s12 = smov 16   ;;  %v813_v44 = vmov 0   ;;  %v85_v55 = vlaneseq }
  0x2c   :  { %v864_v2 = vld [vmem:[#allocation2 + $0x20] sm:$0xff]  ;;  %v69_v3 = vmax.f32 %v860_v0, %v862_v1  ;;  %v67_v4 = vadd.f32 %v862_v1, %v860_v0  ;;  %v872_v6 = vld [vmem:[#allocation2 + $0x18] sm:$0xff]  ;;  %v874_v7 = vld [vmem:[#allocation2 + $0x30] sm:$0xff]  ;;  %s807_s13 = smov 15   ;;  %s808_s14 = smov 1   ;;  %676 = vset.pattern.permute.xlu1 %v813_v44  ;;  %677 = vset.pattern.permute.xlu0 %v813_v44 }
  0x2d   :  { %v70_v8 = vmax.f32 %v870_v5, %v872_v6  ;;  %v878_v9 = vld [vmem:[#allocation2 + $0x28] sm:$0xff]  ;;  %v68_v10 = vadd.f32 %v872_v6, %v870_v5  ;;  %v884_v13 = vld [vmem:[#allocation2 + $0x38] sm:$0xff]  ;;  %s809_s15 = smov 127   ;;  %s810_s16 = smov 113   ;;  %v414_v24 = vld [vmem:[#allocation7 + $0xf0] sm:$0xff]  ;;  %v933_v57 = vand.u32 127, %v85_v55 }
  0x2e   :  { %v75_v11 = vmax.f32 %v69_v3, %v864_v2  ;;  %v73_v12 = vadd.f32 %v864_v2, %v67_v4  ;;  %s811_s17 = smov 112   ;;  %s812_s18 = smov 111   ;;  %v415_v22 = vld [vmem:[#allocation7 + $0xf8] sm:$0xff]  ;;  %v398_v25 = vld [vmem:[#allocation7 + $0x70] sm:$0xff]  ;;  %v413_v26 = vld [vmem:[#allocation7 + $0xe8] sm:$0xff] }
  0x2f   :  { %v76_v14 = vmax.f32 %v70_v8, %v878_v9  ;;  %v74_v15 = vadd.f32 %v878_v9, %v68_v10  ;;  %625 = vmatprep.subr.mxu0 %v415_v22  ;;  %v399_v23 = vld [vmem:[#allocation7 + $0x78] sm:$0xff]  ;;  %v397_v27 = vld [vmem:[#allocation7 + $0x68] sm:$0xff]  ;;  %v412_v28 = vld [vmem:[#allocation7 + $0xe0] sm:$0xff]  ;;  %v936_v59 = vadd.s32 128, %v933_v57  ;;  %v92_v61 = vand.u32 15, %v933_v57  ;;  %s939_s19 = sld [smem:[#allocation6]] }
  0x30   :  { %v889_v16 = vmax.f32 %v75_v11, %v874_v7  ;;  %v79_v17 = vadd.f32 %v874_v7, %v73_v12  ;;  %626 = vmatpush3.msra.mxu0 %v399_v23  ;;  %v396_v29 = vld [vmem:[#allocation7 + $0x60] sm:$0xff]  ;;  %v411_v30 = vld [vmem:[#allocation7 + $0xd8] sm:$0xff]  ;;  %v410_v32 = vld [vmem:[#allocation7 + $0xd0] sm:$0xff]  ;;  %s941_s20 = sld [smem:[#allocation6 + $0x9]]  ;;  %vm112_vm0 = vcmp.ge.s32.totalorder %v933_v57, 16  ;;  %vm127_vm2 = vcmp.lt.s32.totalorder %v933_v57, 17 }
  0x31   :  { %v80_v18 = vadd.f32 %v884_v13, %v74_v15  ;;  %v897_v20 = vmax.f32 %v76_v14, %v884_v13  ;;  %627 = vmatprep.subr.mxu0 %v414_v24  ;;  %v395_v31 = vld [vmem:[#allocation7 + $0x58] sm:$0xff]  ;;  %v394_v33 = vld [vmem:[#allocation7 + $0x50] sm:$0xff]  ;;  %v409_v34 = vld [vmem:[#allocation7 + $0xc8] sm:$0xff]  ;;  %v99_v63 = vand.u32 15, %v936_v59  ;;  %vm945_vm1 = vcmp.ge.s32.totalorder %v92_v61, 1  ;;  %s950_s21 = sld [smem:[#allocation6 + $0x1]] }
  0x32   :  { %138 = vrot.lane.b32.xlu1 %v889_v16, %s805_s2  ;;  %v894_v19 = vmul.f32 0.25, %v79_v17  ;;  %628 = vmatpush3.msra.mxu0 %v398_v25  ;;  %v393_v35 = vld [vmem:[#allocation7 + $0x48] sm:$0xff]  ;;  %v408_v36 = vld [vmem:[#allocation7 + $0xc0] sm:$0xff]  ;;  %v407_v38 = vld [vmem:[#allocation7 + $0xb8] sm:$0xff]  ;;  %s952_s22 = sld [smem:[#allocation6 + $0xa]]  ;;  %vm156_vm3 = vcmp.lt.s32.totalorder %v933_v57, 16 }
  0x33   :  { %v900_v21 = vmul.f32 0.25, %v80_v18  ;;  %629 = vmatprep.subr.mxu0 %v413_v26  ;;  %v392_v37 = vld [vmem:[#allocation7 + $0x40] sm:$0xff]  ;;  %v391_v39 = vld [vmem:[#allocation7 + $0x38] sm:$0xff]  ;;  %v406_v40 = vld [vmem:[#allocation7 + $0xb0] sm:$0xff]  ;;  %vm955_vm4 = vcmp.ge.s32.totalorder %v99_v63, 1  ;;  %s970_s23 = sld [smem:[#allocation6 + $0x2]] }
  0x34   :  { %123 = vrot.lane.b32.xlu0 %v894_v19, %s805_s2  ;;  %630 = vmatpush3.msra.mxu0 %v397_v27  ;;  %v390_v41 = vld [vmem:[#allocation7 + $0x30] sm:$0xff]  ;;  %v405_v42 = vld [vmem:[#allocation7 + $0xa8] sm:$0xff]  ;;  %v404_v45 = vld [vmem:[#allocation7 + $0xa0] sm:$0xff]  ;;  %s981_s24 = sld [smem:[#allocation6 + $0xb]]  ;;  %vm985_vm6 = vcmp.lt.s32.totalorder %v92_v61, 15  ;;  %vm187_vm7 = vcmp.lt.s32.totalorder %v933_v57, 15 }
  0x35   :  { %631 = vmatprep.subr.mxu0 %v412_v28  ;;  %v389_v43 = vld [vmem:[#allocation7 + $0x28] sm:$0xff]  ;;  %v388_v46 = vld [vmem:[#allocation7 + $0x20] sm:$0xff]  ;;  %v403_v47 = vld [vmem:[#allocation7 + $0x98] sm:$0xff]  ;;  %v132_v22 = vstv %s939_s19  ;;  %s995_s25 = sld [smem:[#allocation6 + $0x3]]  ;;  %vm998_vm8 = vcmp.lt.s32.totalorder %v99_v63, 15  ;;  %vm216_vm10 = vcmp.lt.s32.totalorder %v933_v57, 1 }
  0x36   :  { %140 = vrot.lane.b32.xlu1 %v897_v20, %s805_s2  ;;  %632 = vmatpush3.msra.mxu0 %v396_v29  ;;  %v387_v48 = vld [vmem:[#allocation7 + $0x18] sm:$0xff]  ;;  %v402_v49 = vld [vmem:[#allocation7 + $0x90] sm:$0xff]  ;;  %v401_v51 = vld [vmem:[#allocation7 + $0x88] sm:$0xff]  ;;  %v146_v27 = vstv %s941_s20  ;;  %s1002_s26 = sld [smem:[#allocation6 + $0x4]]  ;;  %vm257_vm11 = vcmp.lt.s32.totalorder %v933_v57, 127  ;;  %vm288_vm12 = vcmp.lt.s32.totalorder %v933_v57, 113 }
  0x37   :  { %633 = vmatprep.subr.mxu0 %v411_v30  ;;  %v386_v50 = vld [vmem:[#allocation7 + $0x10] sm:$0xff]  ;;  %v385_v52 = vld [vmem:[#allocation7 + $0x8] sm:$0xff]  ;;  %v400_v53 = vld [vmem:[#allocation7 + $0x80] sm:$0xff]  ;;  %s1025_s27 = sld [smem:[#allocation6 + $0xc]]  ;;  %vm115_vm13 = vcmp.lt.s32.totalorder %v936_v59, 240  ;;  %vm317_vm15 = vcmp.lt.s32.totalorder %v933_v57, 112 }
  0x38   :  { %125 = vrot.lane.b32.xlu0 %v900_v21, %s805_s2  ;;  %634 = vmatpush3.msra.mxu0 %v395_v31  ;;  %v384_v54 = vld [vmem:[#allocation7] sm:$0xff]  ;;  %vm963_vm5 = vmand %vm112_vm0, %vm945_vm1  ;;  %s1037_s28 = sld [smem:[#allocation6 + $0xd]] }
  0x39   :  { %635 = vmatprep.subr.mxu0 %v410_v32  ;;  %vm1012_vm9 = vmand %vm112_vm0, %vm985_vm6  ;;  %s1063_s29 = sld [smem:[#allocation6 + $0x5]] }
  0x3a   :  { %154 = vrot.lane.b32.xlu1 %v900_v21, %s806_s12  ;;  %636 = vmatpush3.msra.mxu0 %v394_v33  ;;  %s1066_s1 = sld [smem:[#allocation6 + $0xe]]  ;;  %vm1098_vm14 = vmand %vm115_vm13, %vm955_vm4 }
  0x3b   :  { %637 = vmatprep.subr.mxu0 %v409_v34  ;;  %s1068_s30 = sld [smem:[#allocation6 + $0x6]] }
  0x3c   :  { %152 = vrot.lane.b32.xlu0 %v894_v19, %s806_s12  ;;  %638 = vmatpush3.msra.mxu0 %v393_v35  ;;  %v161_v35 = vstv %s950_s21  ;;  %s1075_s7 = sld [smem:[#allocation6 + $0xf]] }
  0x3d   :  { %639 = vmatprep.subr.mxu0 %v408_v36  ;;  %s1089_s8 = sld [smem:[#allocation6 + $0x7]] }
  0x3e   :  { %169 = vrot.lane.b32.xlu1 %v897_v20, %s806_s12  ;;  %640 = vmatpush3.msra.mxu0 %v392_v37  ;;  %s1109_s0 = sld [smem:[#allocation6 + $0x10]] }
  0x3f   :  { %641 = vmatprep.subr.mxu0 %v407_v38  ;;  %s1121_s9 = sld [smem:[#allocation6 + $0x8]] }
  0x40   :  { %167 = vrot.lane.b32.xlu0 %v889_v16, %s806_s12  ;;  %642 = vmatpush3.msra.mxu0 %v391_v39  ;;  %s1132_s10 = sld [smem:[#allocation6 + $0x11]] }
  0x41   :  { %643 = vmatprep.subr.mxu0 %v406_v40  ;;  %v175_v40 = vstv %s952_s22 }
  0x42   :  { %185 = vrot.lane.b32.xlu1 %v900_v21, %s807_s13  ;;  %644 = vmatpush3.msra.mxu0 %v390_v41 }
  0x43   :  { %645 = vmatprep.subr.mxu0 %v405_v42 }
  0x44   :  { %183 = vrot.lane.b32.xlu0 %v894_v19, %s807_s13  ;;  %646 = vmatpush3.msra.mxu0 %v389_v43 }
  0x45   :  { %647 = vmatprep.subr.mxu0 %v404_v45 }
  0x46   :  { %200 = vrot.lane.b32.xlu1 %v897_v20, %s807_s13  ;;  %648 = vmatpush3.msra.mxu0 %v388_v46 }
  0x47   :  { %649 = vmatprep.subr.mxu0 %v403_v47 }
  0x48   :  { %198 = vrot.lane.b32.xlu0 %v889_v16, %s807_s13  ;;  %650 = vmatpush3.msra.mxu0 %v387_v48 }
  0x49   :  { %651 = vmatprep.subr.mxu0 %v402_v49 }
  0x4a   :  { %214 = vrot.lane.b32.xlu1 %v900_v21, %s808_s14  ;;  %652 = vmatpush3.msra.mxu0 %v386_v50 }
  0x4b   :  { %653 = vmatprep.subr.mxu0 %v401_v51 }
  0x4c   :  { %212 = vrot.lane.b32.xlu0 %v894_v19, %s808_s14  ;;  %654 = vmatpush3.msra.mxu0 %v385_v52 }
  0x4d   :  { %655 = vmatprep.subr.mxu0 %v400_v53  ;;  %v192_v53 = vstv %s970_s23 }
  0x4e   :  { %229 = vrot.lane.b32.xlu1 %v897_v20, %s808_s14  ;;  %656 = vmatpush3.msra.mxu0 %v384_v54 }
  0x50   :  { %227 = vrot.lane.b32.xlu0 %v889_v16, %s808_s14  ;;  %s815_s14 = smov [#allocation9]  }
  0x52   :  { %255 = vrot.lane.b32.xlu1 %v900_v21, %s809_s15 }
  0x54   :  { %253 = vrot.lane.b32.xlu0 %v894_v19, %s809_s15 }
  0x56   :  { %270 = vrot.lane.b32.xlu1 %v897_v20, %s809_s15 }
  0x58   :  { %268 = vrot.lane.b32.xlu0 %v889_v16, %s809_s15  ;;  %s582_s15 = sshll.u32 %s815_s14, 4  ;;  %s583_s15 = int_to_ptr.vmem [resolvable:$true] %s582_s15 }
  0x5a   :  { %286 = vrot.lane.b32.xlu1 %v900_v21, %s810_s16 }
  0x5c   :  { %284 = vrot.lane.b32.xlu0 %v894_v19, %s810_s16 }
  0x5e   :  { %301 = vrot.lane.b32.xlu1 %v897_v20, %s810_s16 }
  0x60   :  { %299 = vrot.lane.b32.xlu0 %v889_v16, %s810_s16 }
  0x62   :  { %315 = vrot.lane.b32.xlu1 %v900_v21, %s811_s17 }
  0x64   :  { %313 = vrot.lane.b32.xlu0 %v894_v19, %s811_s17 }
  0x66   :  { %330 = vrot.lane.b32.xlu1 %v897_v20, %s811_s17 }
  0x68   :  { %328 = vrot.lane.b32.xlu0 %v889_v16, %s811_s17 }
  0x6a   :  { %346 = vrot.lane.b32.xlu1 %v900_v21, %s812_s18 }
  0x6c   :  { %344 = vrot.lane.b32.xlu0 %v894_v19, %s812_s18 }
  0x6e   :  { %361 = vrot.lane.b32.xlu1 %v897_v20, %s812_s18 }
  0x70   :  { %359 = vrot.lane.b32.xlu0 %v889_v16, %s812_s18 }
  0xa4   :  { %v139_v56 = vpop.permute.xlu1 %138 }
  0xa6   :  { %v124_v58 = vpop.permute.xlu0 %123 }
  0xa8   :  { %v141_v60 = vpop.permute.xlu1 %140 }
  0xa9   :  { %v142_v15 = vsel %vm127_vm2, %v139_v56, %v141_v60  ;;  %v143_v17 = vsel %vm127_vm2, %v141_v60, %v139_v56 }
  0xaa   :  { %v126_v62 = vpop.permute.xlu0 %125  ;;  %v144_v28 = vsel %vm963_vm5, %v143_v17, 0.0  ;;  %v145_v29 = vsel %vm955_vm4, %v142_v15, 0.0 }
  0xab   :  { %v128_v8 = vsel %vm127_vm2, %v124_v58, %v126_v62  ;;  %v129_v11 = vsel %vm127_vm2, %v126_v62, %v124_v58  ;;  %v147_v38 = vmul.f32 %v146_v27, %v144_v28  ;;  %v148_v39 = vmul.f32 %v146_v27, %v145_v29 }
  0xac   :  { %v155_v3 = vpop.permute.xlu1 %154  ;;  %v131_v23 = vsel %vm955_vm4, %v128_v8, 0.0  ;;  %v130_v24 = vsel %vm963_vm5, %v129_v11, 0.0  ;;  %v206_v62 = vstv %s981_s24 }
  0xad   :  { %v134_v30 = vmul.f32 %v132_v22, %v131_v23  ;;  %v133_v34 = vmul.f32 %v132_v22, %v130_v24  ;;  %v221_v24 = vstv %s995_s25 }
  0xae   :  { %v153_v10 = vpop.permute.xlu0 %152 }
  0xaf   :  { %v158_v25 = vsel %vm156_vm3, %v155_v3, %v153_v10  ;;  %v157_v36 = vsel %vm156_vm3, %v153_v10, %v155_v3  ;;  %v150_v48 = vadd.f32 %v148_v39, %v134_v30  ;;  %v149_v52 = vadd.f32 %v147_v38, %v133_v34 }
  0xb0   :  { %v170_v18 = vpop.permute.xlu1 %169  ;;  %v159_v37 = vsel %vm112_vm0, %v158_v25, 0.0  ;;  %v163_v50 = vmul.f32 %v161_v35, %v157_v36  ;;  %v235_v39 = vstv %s1025_s27 }
  0xb1   :  { %v162_v49 = vmul.f32 %v161_v35, %v159_v37 }
  0xb2   :  { %v168_v26 = vpop.permute.xlu0 %167  ;;  %v165_v10 = vadd.f32 %v163_v50, %v150_v48 }
  0xb3   :  { %v172_v31 = vsel %vm156_vm3, %v170_v18, %v168_v26  ;;  %v171_v43 = vsel %vm156_vm3, %v168_v26, %v170_v18  ;;  %v164_v8 = vadd.f32 %v162_v49, %v149_v52  ;;  %v241_v26 = vstv %s1002_s26 }
  0xb4   :  { %v186_v32 = vpop.permute.xlu1 %185  ;;  %v173_v44 = vsel %vm112_vm0, %v172_v31, 0.0  ;;  %v177_v56 = vmul.f32 %v175_v40, %v171_v43  ;;  %v242_v49 = vmul.f32 %v241_v26, %v894_v19  ;;  %vm348_vm0 = vcmp.lt.s32.totalorder %v933_v57, 111 }
  0xb5   :  { %v176_v54 = vmul.f32 %v175_v40, %v173_v44  ;;  %v243_v40 = vmul.f32 %v241_v26, %v900_v21 }
  0xb6   :  { %v184_v42 = vpop.permute.xlu0 %183  ;;  %v179_v23 = vadd.f32 %v177_v56, %v165_v10 }
  0xb7   :  { %v188_v46 = vsel %vm187_vm7, %v184_v42, %v186_v32  ;;  %v189_v47 = vsel %vm187_vm7, %v186_v32, %v184_v42  ;;  %v178_v22 = vadd.f32 %v176_v54, %v164_v8 }
  0xb8   :  { %v201_v51 = vpop.permute.xlu1 %200  ;;  %v190_v58 = vsel %vm1012_vm9, %v189_v47, 0.0  ;;  %v191_v60 = vsel %vm998_vm8, %v188_v46, 0.0 }
  0xb9   :  { %v193_v17 = vmul.f32 %v192_v53, %v190_v58  ;;  %v194_v18 = vmul.f32 %v192_v53, %v191_v60 }
  0xba   :  { %v199_v61 = vpop.permute.xlu0 %198 }
  0xbb   :  { %v202_v63 = vsel %vm187_vm7, %v199_v61, %v201_v51  ;;  %v203_v3 = vsel %vm187_vm7, %v201_v51, %v199_v61  ;;  %v195_v35 = vadd.f32 %v193_v17, %v178_v22  ;;  %v196_v36 = vadd.f32 %v194_v18, %v179_v23 }
  0xbc   :  { %v204_v11 = vsel %vm1012_vm9, %v203_v3, 0.0  ;;  %v205_v14 = vsel %vm998_vm8, %v202_v63, 0.0  ;;  %v215_v15 = vpop.permute.xlu1 %214  ;;  %v247_v51 = vstv %s1037_s28  ;;  %v262_v18 = vstv %s1063_s29 }
  0xbd   :  { %v207_v27 = vmul.f32 %v206_v62, %v204_v11  ;;  %v208_v28 = vmul.f32 %v206_v62, %v205_v14  ;;  %v248_v61 = vmul.f32 %v247_v51, %v889_v16  ;;  %v249_v62 = vmul.f32 %v247_v51, %v897_v20 }
  0xbe   :  { %v213_v25 = vpop.permute.xlu0 %212 }
  0xbf   :  { %v217_v29 = vsel %vm216_vm10, %v213_v25, %v215_v15  ;;  %v218_v30 = vsel %vm216_vm10, %v215_v15, %v213_v25  ;;  %v209_v43 = vadd.f32 %v207_v27, %v195_v35  ;;  %v210_v44 = vadd.f32 %v208_v28, %v196_v36 }
  0xc0   :  { %v219_v31 = vsel %vm945_vm1, %v218_v30, 0.0  ;;  %v220_v32 = vsel %vm955_vm4, %v217_v29, 0.0  ;;  %v230_v34 = vpop.permute.xlu1 %229  ;;  %v276_v27 = vstv %s1066_s1  ;;  %v293_v35 = vstv %s1068_s30 }
  0xc1   :  { %v222_v37 = vmul.f32 %v221_v24, %v219_v31  ;;  %v223_v38 = vmul.f32 %v221_v24, %v220_v32 }
  0xc2   :  { %v228_v42 = vpop.permute.xlu0 %227 }
  0xc3   :  { %v231_v45 = vsel %vm216_vm10, %v228_v42, %v230_v34  ;;  %v232_v46 = vsel %vm216_vm10, %v230_v34, %v228_v42  ;;  %v224_v21 = vadd.f32 %v222_v37, %v209_v43  ;;  %v225_v52 = vadd.f32 %v223_v38, %v210_v44 }
  0xc4   :  { %v233_v47 = vsel %vm945_vm1, %v232_v46, 0.0  ;;  %v234_v48 = vsel %vm955_vm4, %v231_v45, 0.0  ;;  %v256_v50 = vpop.permute.xlu1 %255  ;;  %v307_v46 = vstv %s1075_s7 }
  0xc5   :  { %v236_v53 = vmul.f32 %v235_v39, %v233_v47  ;;  %v237_v54 = vmul.f32 %v235_v39, %v234_v48 }
  0xc6   :  { %v254_v56 = vpop.permute.xlu0 %253 }
  0xc7   :  { %v238_v58 = vadd.f32 %v236_v53, %v224_v21  ;;  %v239_v60 = vadd.f32 %v237_v54, %v225_v52  ;;  %v258_v16 = vsel %vm257_vm11, %v254_v56, %v256_v50  ;;  %v259_v20 = vsel %vm257_vm11, %v256_v50, %v254_v56 }
  0xc8   :  { %v271_v63 = vpop.permute.xlu1 %270  ;;  %v260_v22 = vsel %vm985_vm6, %v258_v16, 0.0  ;;  %v261_v25 = vsel %vm998_vm8, %v259_v20, 0.0  ;;  %v322_v56 = vstv %s1089_s8 }
  0xc9   :  { %v244_v3 = vadd.f32 %v242_v49, %v238_v58  ;;  %v245_v8 = vadd.f32 %v243_v40, %v239_v60  ;;  %v263_v32 = vmul.f32 %v262_v18, %v260_v22  ;;  %v264_v12 = vmul.f32 %v262_v18, %v261_v25 }
  0xca   :  { %v269_v19 = vpop.permute.xlu0 %268  ;;  %v353_v22 = vstv %s1121_s9 }
  0xcb   :  { %v251_v10 = vadd.f32 %v249_v62, %v245_v8  ;;  %v250_v11 = vadd.f32 %v248_v61, %v244_v3  ;;  %v272_v17 = vsel %vm257_vm11, %v269_v19, %v271_v63  ;;  %v273_v23 = vsel %vm257_vm11, %v271_v63, %v269_v19 }
  0xcc   :  { %v287_v14 = vpop.permute.xlu1 %286  ;;  %v274_v28 = vsel %vm985_vm6, %v272_v17, 0.0  ;;  %v275_v34 = vsel %vm998_vm8, %v273_v23, 0.0  ;;  %v336_v3 = vstv %s1109_s0  ;;  %v507_v17 = vld [vmem:[%s1193_s4] sm:$0x3] }
  0xcd   :  { %v265_v40 = vadd.f32 %v263_v32, %v250_v11  ;;  %v277_v42 = vmul.f32 %v276_v27, %v274_v28  ;;  %v266_v44 = vadd.f32 %v264_v12, %v251_v10  ;;  %v278_v45 = vmul.f32 %v276_v27, %v275_v34 }
  0xce   :  { %v285_v15 = vpop.permute.xlu0 %284  ;;  %v367_v34 = vstv %s1132_s10 }
  0xcf   :  { %v289_v26 = vsel %vm288_vm12, %v285_v15, %v287_v14  ;;  %v290_v30 = vsel %vm288_vm12, %v287_v14, %v285_v15  ;;  %v279_v53 = vadd.f32 %v277_v42, %v265_v40  ;;  %v280_v58 = vadd.f32 %v278_v45, %v266_v44 }
  0xd0   :  { %v302_v24 = vpop.permute.xlu1 %301  ;;  %v291_v37 = vsel %vm945_vm1, %v289_v26, 0.0  ;;  %v292_v43 = vsel %vm1098_vm14, %v290_v30, 0.0 }
  0xd1   :  { %v294_v49 = vmul.f32 %v293_v35, %v291_v37  ;;  %v295_v21 = vmul.f32 %v293_v35, %v292_v43 }
  0xd2   :  { %v300_v31 = vpop.permute.xlu0 %299 }
  0xd3   :  { %v303_v36 = vsel %vm288_vm12, %v300_v31, %v302_v24  ;;  %v304_v38 = vsel %vm288_vm12, %v302_v24, %v300_v31  ;;  %v296_v63 = vadd.f32 %v294_v49, %v279_v53  ;;  %v297_v19 = vadd.f32 %v295_v21, %v280_v58 }
  0xd4   :  { %v316_v39 = vpop.permute.xlu1 %315  ;;  %v305_v47 = vsel %vm945_vm1, %v303_v36, 0.0  ;;  %v306_v50 = vsel %vm1098_vm14, %v304_v38, 0.0  ;;  %vm1146_vm1 = vmand %vm115_vm13, %vm998_vm8 }
  0xd5   :  { %v308_v54 = vmul.f32 %v307_v46, %v305_v47  ;;  %v309_v60 = vmul.f32 %v307_v46, %v306_v50 }
  0xd6   :  { %v314_v48 = vpop.permute.xlu0 %313 }
  0xd7   :  { %v319_v51 = vsel %vm317_vm15, %v316_v39, %v314_v48  ;;  %v318_v4 = vsel %vm317_vm15, %v314_v48, %v316_v39  ;;  %v310_v16 = vadd.f32 %v308_v54, %v296_v63  ;;  %v311_v18 = vadd.f32 %v309_v60, %v297_v19 }
  0xd8   :  { %v331_v52 = vpop.permute.xlu1 %330  ;;  %v321_v61 = vsel %vm115_vm13, %v319_v51, 0.0  ;;  %v323_v20 = vmul.f32 %v322_v56, %v318_v4  ;;  %v624_v4 = vld [vmem:[%s1192_s3] ss:$0 sm:$0xff]  ;;  %s814_s3 = smov [#allocation10]  }
  0xd9   :  { %v324_v15 = vmul.f32 %v322_v56, %v321_v61  ;;  %s592_s4 = sshll.u32 %s814_s3, 4  ;;  %s593_s4 = int_to_ptr.vmem [resolvable:$true] %s592_s4 }
  0xda   :  { %v329_v62 = vpop.permute.xlu0 %328  ;;  %v325_v29 = vadd.f32 %v323_v20, %v310_v16  ;;  %s750_s16 = scalar_lea.vmem %s593_s4, 256  ;;  %p755_p2 = scmp.lt.s32.totalorder %s593_s4, %s593_s4 }
  0xdb   :  { %v333_v8 = vsel %vm317_vm15, %v331_v52, %v329_v62  ;;  %v332_v10 = vsel %vm317_vm15, %v329_v62, %v331_v52  ;;  %v326_v30 = vadd.f32 %v324_v15, %v311_v18  ;;  %p751_p1 = scmp.ne.s32.totalorder %s593_s4, %s750_s16  ;;  %p756_p3 = scmp.lt.s32.totalorder %s750_s16, %s750_s16 }
  0xdc   :  { %v335_v11 = vsel %vm115_vm13, %v333_v8, 0.0  ;;  %v347_v14 = vpop.permute.xlu1 %346  ;;  %v337_v24 = vmul.f32 %v336_v3, %v332_v10 }
  0xdd   :  { %v338_v25 = vmul.f32 %v336_v3, %v335_v11  ;;  %p757_p4 = por %p756_p3, %p755_p2 }
  0xde   :  { %v345_v23 = vpop.permute.xlu0 %344  ;;  %v339_v36 = vadd.f32 %v337_v24, %v325_v29 }
  0xdf   :  { %v349_v26 = vsel %vm348_vm0, %v345_v23, %v347_v14  ;;  %v350_v27 = vsel %vm348_vm0, %v347_v14, %v345_v23  ;;  %v340_v12 = vadd.f32 %v338_v25, %v326_v30  ;;  %v510_v14 = vshrl.u32 %v85_v55, 7  ;;  %p758_p5 = pnand %p757_p4, %p751_p1 }
  0xe0   :  { %v351_v41 = vsel %vm985_vm6, %v349_v26, 0.0  ;;  %v352_v59 = vsel %vm1146_vm1, %v350_v27, 0.0  ;;  %v362_v28 = vpop.permute.xlu1 %361 }
  0xe1   :  { %v354_v31 = vmul.f32 %v353_v22, %v351_v41  ;;  %v355_v32 = vmul.f32 %v353_v22, %v352_v59  ;;  %v511_v16 = vsub.s32 0, %v510_v14  ;;  %v515_v20 = vsub.s32 1, %v510_v14 }
  0xe2   :  { %v360_v35 = vpop.permute.xlu0 %359 }
  0xe3   :  { %v363_v37 = vsel %vm348_vm0, %v360_v35, %v362_v28  ;;  %v364_v38 = vsel %vm348_vm0, %v362_v28, %v360_v35  ;;  %v356_v42 = vadd.f32 %v354_v31, %v339_v36  ;;  %v357_v43 = vadd.f32 %v355_v32, %v340_v12 }
  0xe4   :  { %v365_v39 = vsel %vm985_vm6, %v363_v37, 0.0  ;;  %v366_v40 = vsel %vm1146_vm1, %v364_v38, 0.0  ;;  %v512_v23 = vrot.slane %v507_v17, %v511_v16  ;;  %v516_v24 = vrot.slane %v507_v17, %v515_v20 }
  0xe5   :  { %v368_v44 = vmul.f32 %v367_v34, %v365_v39  ;;  %v369_v45 = vmul.f32 %v367_v34, %v366_v40 }
  0xe7   :  { %v370_v46 = vadd.f32 %v368_v44, %v356_v42  ;;  %v371_v47 = vadd.f32 %v369_v45, %v357_v43 }
  0xe9   :  { %v372_v48 = vsub.f32 0.0, %v370_v46  ;;  %v373_v49 = vsub.f32 0.0, %v371_v47 }
  0xeb   :  { %v374_v50 = vmul.f32 1.442695, %v372_v48  ;;  %v376_v51 = vmul.f32 1.442695, %v373_v49 }
  0xed   :  { %678 = vpow2.f32 %v374_v50 }
  0xee   :  { %680 = vpow2.f32 %v376_v51 }
  0xfa   :  { %v679_v57 = vpop.eup %678 }
  0xfb   :  { %v681_v21 = vpop.eup %680  ;;  %v378_v52 = vadd.f32 1.0, %v679_v57 }
  0xfc   :  { %v379_v33 = vadd.f32 1.0, %v681_v21 }
  0xfd   :  { %682 = vrcp.f32 %v378_v52 }
  0xfe   :  { %684 = vrcp.f32 %v379_v33 }
 0x10a   :  { %v683_v53 = vpop.eup %682 }
 0x10b   :  { %v685_v54 = vpop.eup %684 }
 0x10c   :  { %523 = vperm.xlu1 %676, %v685_v54   ;;  %480 = vmatprep.mubr.f32.mxu0 %v685_v54 }
 0x10d   :  { %481 = vmatmul.mubr.f32.vlgmr.msra.gmra.mxu0 %v683_v53 }
 0x187   :  { %v524_v59 = vpop.permute.xlu1 %523 }
 0x188   :  { %v540_v37 = vsub.f32 %v683_v53, %v524_v59  ;;  %v541_v38 = vsub.f32 %v685_v54, %v524_v59 }
 0x18a   :  { %v542_v39 = vand.u32 2147483647, %v540_v37  ;;  %v543_v40 = vand.u32 2147483647, %v541_v38 }
 0x18c   :  { %v544_v42 = vsub.f32 1.0, %v542_v39  ;;  %v545_v43 = vsub.f32 1.0, %v543_v40 }
 0x18e   :  { %v548_v46 = vmul.f32 0.5, %v544_v42  ;;  %v549_v48 = vmul.f32 0.5, %v545_v43 }
 0x1cd   :  { %v657_v56 = vpop.f32.mrf.mxu0 }
 0x1cf   :  { %v658_v58 = vpop.f32.mrf.mxu0 }
 0x1d0   :  { %v659_v60 = vadd.f32 %v658_v58, %v657_v56 }
 0x1d2   :  { %v486_v61 = vmax.f32 %v659_v60, 0.0 }
 0x1d4   :  { %v494_v62 = vmul.f32 %v624_v4, %v486_v61 }
 0x1d6   :  { %495 = vadd.xlane.f32.xlu0 %v494_v62 }
 0x25f   :  { %v496_v63 = vpop.xlane.xlu0 %495 }
 0x260   :  { %v498_v3 = vand.u32 2147483647, %v496_v63  ;;  %v497_v18 = vmax.f32 %v496_v63, 0.0 }
 0x262   :  { %v499_v8 = vsub.f32 0.0, %v498_v3 }
 0x264   :  { %v500_v19 = vmul.f32 1.442695, %v499_v8 }
 0x266   :  { %686 = vpow2.f32 %v500_v19 }
 0x273   :  { %v687_v10 = vpop.eup %686 }
 0x274   :  { %v502_v11 = vadd.f32 1.0, %v687_v10 }
 0x276   :  { %688 = vlog2.f32 %v502_v11 }
 0x283   :  { %v689_v15 = vpop.eup %688 }
 0x284   :  { %v504_v22 = vmul.f32 0.6931472, %v689_v15 }
 0x286   :  { %v505_v25 = vadd.f32 %v504_v22, %v497_v18 }
 0x288   :  { %v506_v26 = vsub.f32 0.0, %v505_v25 }
 0x28a   :  { %v519_v27 = vmul.f32 %v512_v23, %v506_v26  ;;  %v520_v41 = vmul.f32 %v516_v24, %v506_v26 }
 0x28c   :  { %v526_v28 = vadd.f32 %v524_v59, %v519_v27  ;;  %v527_v29 = vadd.f32 %v524_v59, %v520_v41 }
 0x28e   :  { %v528_v30 = vsub.f32 0.0, %v526_v28  ;;  %v529_v55 = vsub.f32 0.0, %v527_v29 }
 0x290   :  { %v530_v31 = vmul.f32 1.442695, %v528_v30  ;;  %v532_v32 = vmul.f32 1.442695, %v529_v55 }
 0x292   :  { %690 = vpow2.f32 %v530_v31 }
 0x293   :  { %692 = vpow2.f32 %v532_v32 }
 0x29f   :  { %v691_v34 = vpop.eup %690 }
 0x2a0   :  { %v693_v35 = vpop.eup %692  ;;  %v534_v36 = vadd.f32 1.0, %v691_v34 }
 0x2a1   :  { %v535_v12 = vadd.f32 1.0, %v693_v35 }
 0x2a2   :  { %694 = vrcp.f32 %v534_v36 }
 0x2a3   :  { %696 = vrcp.f32 %v535_v12 }
 0x2af   :  { %v695_v44 = vpop.eup %694 }
 0x2b0   :  { %v697_v45 = vpop.eup %696  ;;  %v546_v47 = vmul.f32 0.5, %v695_v44 }
 0x2b1   :  { %v547_v49 = vmul.f32 0.5, %v697_v45 }
 0x2b2   :  { %v550_v50 = vadd.f32 %v548_v46, %v546_v47 }
 0x2b3   :  { %v551_v51 = vadd.f32 %v549_v48, %v547_v49 }
 0x2b4   :  { %574 = vst [vmem:[#allocation10] sm:$0xff] %v550_v50  ;;  %v552_v57 = vmul.f32 %v550_v50, %v860_v0  ;;  %v558_v21 = vmul.f32 %v550_v50, %v862_v1  ;;  %v564_v52 = vmul.f32 %v550_v50, %v864_v2  ;;  %v570_v33 = vmul.f32 %v550_v50, %v874_v7 }
 0x2b5   :  { %575 = vst [vmem:[#allocation10 + $0x8] sm:$0xff] %v551_v51  ;;  %v553_v53 = vmul.f32 %v551_v51, %v870_v5  ;;  %v559_v54 = vmul.f32 %v551_v51, %v872_v6  ;;  %v565_v56 = vmul.f32 %v551_v51, %v878_v9  ;;  %v571_v58 = vmul.f32 %v551_v51, %v884_v13 }
 0x2b6   :  { %554 = vst [vmem:[#allocation9] sm:$0xff] %v552_v57  ;;  %560 = vst [vmem:[#allocation9 + $0x10] sm:$0xff] %v558_v21 }
 0x2b7   :  { %566 = vst [vmem:[#allocation9 + $0x20] sm:$0xff] %v564_v52  ;;  %572 = vst [vmem:[#allocation9 + $0x30] sm:$0xff] %v570_v33 }
 0x2b8   :  { %761 = shalt.err (!%p758_p5)
}
 0x2b9   :  { %595 = dma.vmem_to_hbm [thread:$0]  %s593_s4, 256, %s1195_s6, [#allocation11]   ;;  %555 = vst [vmem:[#allocation9 + $0x8] sm:$0xff] %v553_v53  ;;  %561 = vst [vmem:[#allocation9 + $0x18] sm:$0xff] %v559_v54 }
 0x2ba   :  { %567 = vst [vmem:[#allocation9 + $0x28] sm:$0xff] %v565_v56  ;;  %573 = vst [vmem:[#allocation9 + $0x38] sm:$0xff] %v571_v58  ;;  %s770_s19 = scalar_lea.vmem %s583_s15, 1024  ;;  %p775_p7 = scmp.lt.s32.totalorder %s583_s15, %s583_s15 }
 0x2bb   :  { %p771_p6 = scmp.ne.s32.totalorder %s583_s15, %s770_s19  ;;  %p776_p8 = scmp.lt.s32.totalorder %s770_s19, %s770_s19 }
 0x2bd   :  { %p777_p9 = por %p776_p8, %p775_p7 }
 0x2bf   :  { %p778_p10 = pnand %p777_p9, %p771_p6 }
 0x2c1   :  { %781 = shalt.err (!%p778_p10)
}
 0x2c2   :  { %585 = dma.vmem_to_hbm [thread:$0]  %s583_s15, 1024, %s1194_s5, [#allocation4]  }
 0x2c3   :  { %796 = dma.done.wait [#allocation4], 1024  }
 0x2c4   :  { %797 = vsyncadd [#allocation4], 4294966272 }
 0x2c5   :  { %798 = dma.done.wait [#allocation11], 256  }
 0x2c6   :  { %799 = vsyncadd [#allocation11], 4294967040 }
 0x2c7   :  { %602 = vsyncpa [#allocation3], 1 }
 0x2c8   :  { %603 = vsyncpa [#allocation8], 1 }
 0x2c9   :  { %604 = vsyncpa [#allocation4], 1 }
 0x2ca   :  { %605 = vsyncpa [#allocation11], 1 }
 0x2cb   :  { %606 = vsyncpa [#allocation5], 1 }

</bundles_post_ra>
